<compile_context>
chip_gen: v5e
topology: v5e:2x2
jax: 0.10.0
libtpu: 0.0.40
codegen_flags: <defaults>
</compile_context>

<pallas_src>
import functools

import jax
import jax.numpy as jnp
from jax.experimental import pallas as pl
from jax.experimental.pallas import tpu as pltpu


_VMEM_LIMIT = 32 * 1024 * 1024      # explicit scoped-VMEM budget (v5e default is only 16 MiB)
_PANEL_BUDGET = 12 * 1024 * 1024    # double-buffered A+B panel budget per matmul call


def _ru(x, m):
    return (x + m - 1) // m * m


# ----------------------------- Pallas kernels ------------------------------

def _matmul_bias_kernel(*refs, relu, has_res):
    """Single-K-panel fused matmul: out = A @ B + bias (+residual) (+ReLU).
    BN scale is folded into B at build time, so there is no scale stream."""
    if has_res:
        a_ref, b_ref, c_ref, r_ref, o_ref = refs
    else:
        a_ref, b_ref, c_ref, o_ref = refs
        r_ref = None
    y = jnp.dot(a_ref[...], b_ref[...],
                preferred_element_type=jnp.float32) + c_ref[...]
    if has_res:
        y = y + r_ref[...].astype(jnp.float32)
    if relu:
        y = jnp.maximum(y, 0.0)
    o_ref[...] = y.astype(o_ref.dtype)


def _matmul_acc_kernel(*refs, relu, has_res):
    """K-tiled matmul with resident f32 VMEM accumulator (grid axis 2 = K)."""
    if has_res:
        a_ref, b_ref, c_ref, r_ref, o_ref, acc_ref = refs
    else:
        a_ref, b_ref, c_ref, o_ref, acc_ref = refs
        r_ref = None

    @pl.when(pl.program_id(2) == 0)
    def _():
        acc_ref[...] = jnp.zeros_like(acc_ref)

    acc_ref[...] += jnp.dot(a_ref[...], b_ref[...],
                            preferred_element_type=jnp.float32)

    @pl.when(pl.program_id(2) == pl.num_programs(2) - 1)
    def _():
        y = acc_ref[...] + c_ref[...]
        if has_res:
            y = y + r_ref[...].astype(jnp.float32)
        if relu:
            y = jnp.maximum(y, 0.0)
        o_ref[...] = y.astype(o_ref.dtype)


def _conv3x3_kernel(x_ref, w_ref, b_ref, o_ref, *, OH, OW, relu, ipb):
    """Stride-1 3x3 conv without an HBM im2col matrix: the whole padded image
    slab sits in VMEM; the 9 taps are statically unrolled matmuls accumulating
    in f32 before the fused bias (+ReLU) epilogue."""
    cp = x_ref.shape[-1]
    tn = o_ref.shape[-1]
    for img in range(ipb):
        acc = jnp.zeros((OH * OW, tn), jnp.float32)
        for kh in range(3):
            for kw in range(3):
                a = x_ref[img, kh:kh + OH, kw:kw + OW, :].reshape(OH * OW, cp)
                acc = acc + jnp.dot(a, w_ref[kh * 3 + kw],
                                    preferred_element_type=jnp.float32)
        y = acc + b_ref[...]
        if relu:
            y = jnp.maximum(y, 0.0)
        o_ref[img * OH * OW:(img + 1) * OH * OW, :] = y.astype(o_ref.dtype)


def _max9_kernel(*refs):
    """Elementwise max over 9 shifted views (pure VPU, lane-dense blocks)."""
    x = refs[0][...]
    for r in refs[1:-1]:
        x = jnp.maximum(x, r[...])
    refs[-1][...] = x


def _gap_fc_kernel(x_ref, w_ref, b_ref, o_ref):
    """Fused global-average-pool + final Linear (single tiny grid step)."""
    feat = jnp.mean(x_ref[...].astype(jnp.float32), axis=1)          # (N, 2048)
    o_ref[...] = jnp.dot(feat.astype(jnp.bfloat16), w_ref[...],
                         preferred_element_type=jnp.float32) + b_ref[...]


# --------------------------- tiled matmul wrapper ---------------------------

def _mm_tiles(M, Kp, Np):
    """Adaptive tile selection (see module docstring)."""
    mp16 = _ru(M, 16)
    tm = mp16 if mp16 <= 512 else (512 if mp16 % 512 == 0 else 256)
    Mp = _ru(M, tm)
    tn = Np if Np <= 512 else 512
    if Np % tn:
        tn = 128
    # Split N so a single-M-tile call still has 2 parallel steps (v7x dual-core).
    if Mp == tm and tn == Np and Np >= 256 and (Np // 2) % 128 == 0:
        tn = Np // 2
    # If N cannot be split, split M instead (only when the halves stay >=128).
    if Mp // tm == 1 and Np // tn == 1 and tm >= 256 and \
            (tm // 2) % 16 == 0 and Mp % (tm // 2) == 0:
        tm //= 2
    # Biggest multiple-of-128 divisor of Kp whose double-buffered panels fit.
    tk, d = 128, 128
    while d <= Kp:
        if Kp % d == 0 and 4 * d * (tm + tn) <= _PANEL_BUDGET:
            tk = d
        d += 128
    return tm, tn, tk, Mp


@functools.lru_cache(maxsize=None)
def _matmul_pcall(Mp, Kp, Np, tm, tn, tk, relu, has_res):
    nk = Kp // tk
    if nk == 1:
        in_specs = [pl.BlockSpec((tm, Kp), lambda i, j: (i, 0)),
                    pl.BlockSpec((Kp, tn), lambda i, j: (0, j)),
                    pl.BlockSpec((1, tn), lambda i, j: (0, j))]
        if has_res:
            in_specs.append(pl.BlockSpec((tm, tn), lambda i, j: (i, j)))
        grid = (Mp // tm, Np // tn)
        out_spec = pl.BlockSpec((tm, tn), lambda i, j: (i, j))
        kernel = functools.partial(_matmul_bias_kernel, relu=relu, has_res=has_res)
        scratch = []
        dims = ("parallel", "parallel")
    else:
        in_specs = [pl.BlockSpec((tm, tk), lambda i, j, k: (i, k)),
                    pl.BlockSpec((tk, tn), lambda i, j, k: (k, j)),
                    pl.BlockSpec((1, tn), lambda i, j, k: (0, j))]
        if has_res:
            in_specs.append(pl.BlockSpec((tm, tn), lambda i, j, k: (i, j)))
        grid = (Mp // tm, Np // tn, nk)
        out_spec = pl.BlockSpec((tm, tn), lambda i, j, k: (i, j))
        kernel = functools.partial(_matmul_acc_kernel, relu=relu, has_res=has_res)
        scratch = [pltpu.VMEM((tm, tn), jnp.float32)]
        dims = ("parallel", "parallel", "arbitrary")
    call = pl.pallas_call(
        kernel,
        out_shape=jax.ShapeDtypeStruct((Mp, Np), jnp.bfloat16),
        grid_spec=pltpu.PrefetchScalarGridSpec(
            num_scalar_prefetch=0, grid=grid, in_specs=in_specs,
            out_specs=out_spec, scratch_shapes=scratch),
        compiler_params=pltpu.CompilerParams(
            dimension_semantics=dims, vmem_limit_bytes=_VMEM_LIMIT),
    )
    return jax.jit(call)


def matmul_bias(a, w_p, bias_p, *, relu, residual=None):
    """(M,K) activations @ pre-padded scale-folded (Kp,Np) bf16 weights + bias
    (+residual) (+ReLU).  Output keeps the channel-padded Np columns so padded
    activations flow to the next layer without pad/slice HBM round-trips."""
    M, K = a.shape
    Kp, Np = w_p.shape
    tm, tn, tk, Mp = _mm_tiles(M, Kp, Np)
    a_p = a.astype(jnp.bfloat16)
    if (Mp, Kp) != (M, K):
        a_p = jnp.pad(a_p, ((0, Mp - M), (0, Kp - K)))
    args = [a_p, w_p, bias_p]
    has_res = residual is not None
    if has_res:
        r = residual.astype(jnp.bfloat16)
        if r.shape != (Mp, Np):
            r = jnp.pad(r, ((0, Mp - r.shape[0]), (0, Np - r.shape[1])))
        args.append(r)
    out = _matmul_pcall(Mp, Kp, Np, tm, tn, tk, relu, has_res)(*args)
    return out if Mp == M else out[:M]


# --------------------------- stride-1 3x3 conv -------------------------------

@functools.lru_cache(maxsize=None)
def _conv3x3_pcall(N, H, W, C, Np, relu):
    OH, OW = H, W
    rows = OH * OW
    ipb = 1 if rows % 8 == 0 else 2       # pack images so out blocks are >=8 rows
    assert N % ipb == 0
    tn = Np
    if N // ipb == 1 and Np >= 256 and (Np // 2) % 128 == 0:
        tn = Np // 2                       # keep 2 parallel steps for v7x
    grid = (N // ipb, Np // tn)
    call = pl.pallas_call(
        functools.partial(_conv3x3_kernel, OH=OH, OW=OW, relu=relu, ipb=ipb),
        out_shape=jax.ShapeDtypeStruct((N * rows, Np), jnp.bfloat16),
        grid_spec=pltpu.PrefetchScalarGridSpec(
            num_scalar_prefetch=0, grid=grid,
            in_specs=[
                pl.BlockSpec((ipb, H + 2, W + 2, C), lambda i, j: (i, 0, 0, 0)),
                pl.BlockSpec((9, C, tn), lambda i, j: (0, 0, j)),
                pl.BlockSpec((1, tn), lambda i, j: (0, j)),
            ],
            out_specs=pl.BlockSpec((ipb * rows, tn), lambda i, j: (i, j))),
        compiler_params=pltpu.CompilerParams(
            dimension_semantics=("parallel", "parallel"),
            vmem_limit_bytes=_VMEM_LIMIT),
    )
    return jax.jit(call)


def conv3x3_s1(x, p, relu=True):
    N, H, W, C = x.shape
    assert C == p["w"].shape[1], "channel-padded input must match tap weights"
    xp = jnp.pad(x.astype(jnp.bfloat16), ((0, 0), (1, 1), (1, 1), (0, 0)))
    Np = p["w"].shape[-1]
    out = _conv3x3_pcall(N, H, W, C, Np, relu)(xp, p["w"], p["bias"])
    return out.reshape(N, H, W, Np)


# ------------------------------ other Pallas ops -----------------------------

@functools.lru_cache(maxsize=None)
def _maxpool_pcall(rows, C, rt):
    call = pl.pallas_call(
        _max9_kernel,
        out_shape=jax.ShapeDtypeStruct((rows, C), jnp.bfloat16),
        grid_spec=pltpu.PrefetchScalarGridSpec(
            num_scalar_prefetch=0, grid=(rows // rt,),
            in_specs=[pl.BlockSpec((rt, C), lambda r: (r, 0))] * 9,
            out_specs=pl.BlockSpec((rt, C), lambda r: (r, 0))),
        compiler_params=pltpu.CompilerParams(
            dimension_semantics=("parallel",), vmem_limit_bytes=_VMEM_LIMIT),
    )
    return jax.jit(call)


def maxpool_3x3_s2_p1(x):
    # TODO(synk): the 9 shifted views are still materialized in HBM by XLA; with
    # channel-padded C=128 the stores are lane-dense and total traffic is <1 MiB
    # at this input size, so an in-kernel shifted-window variant was skipped.
    N, H, W, C = x.shape
    sent = float(jnp.finfo(x.dtype).min)
    xp = jnp.pad(x, ((0, 0), (1, 1), (1, 1), (0, 0)), constant_values=sent)
    OH = (H + 2 - 3) // 2 + 1
    OW = (W + 2 - 3) // 2 + 1
    rows = N * OH * OW
    views = [xp[:, i:i + 2 * OH:2, j:j + 2 * OW:2, :].reshape(rows, C)
             for i in range(3) for j in range(3)]
    rt = 256 if rows % 256 == 0 else rows
    out = _maxpool_pcall(rows, C, rt)(*views)
    return out.reshape(N, OH, OW, C)


@functools.lru_cache(maxsize=None)
def _gapfc_pcall(N, HW, C, Ncp):
    call = pl.pallas_call(
        _gap_fc_kernel,
        out_shape=jax.ShapeDtypeStruct((N, Ncp), jnp.float32),
        grid_spec=pltpu.PrefetchScalarGridSpec(
            num_scalar_prefetch=0, grid=(1,),
            in_specs=[pl.BlockSpec((N, HW, C), lambda i: (0, 0, 0)),
                      pl.BlockSpec((C, Ncp), lambda i: (0, 0)),
                      pl.BlockSpec((1, Ncp), lambda i: (0, 0))],
            out_specs=pl.BlockSpec((N, Ncp), lambda i: (0, 0))),
        compiler_params=pltpu.CompilerParams(
            dimension_semantics=("arbitrary",), vmem_limit_bytes=_VMEM_LIMIT),
    )
    return jax.jit(call)


def gap_fc(x, fc_w, fc_b, num_classes):
    N, H, W, C = x.shape
    x2 = x.reshape(N, H * W, C).astype(jnp.bfloat16)
    Ncp = fc_w.shape[1]
    out = _gapfc_pcall(N, H * W, C, Ncp)(x2, fc_w, fc_b)
    return out[:, :num_classes]


# ------------------------------ JAX glue ops --------------------------------

def _im2col(x, k, stride, pad):
    """NHWC -> (N*OH*OW, k*k*C) patch matrix (ordering (kh, kw, C)), bf16."""
    N, H, W, C = x.shape
    xp = jnp.pad(x, ((0, 0), (pad, pad), (pad, pad), (0, 0)))
    Hp, Wp = H + 2 * pad, W + 2 * pad
    OH = (Hp - k) // stride + 1
    OW = (Wp - k) // stride + 1
    cols = [xp[:, i:i + stride * OH:stride, j:j + stride * OW:stride, :]
            for i in range(k) for j in range(k)]
    patches = jnp.stack(cols, axis=3)                 # (N, OH, OW, k*k, C)
    return patches.reshape(N * OH * OW, k * k * C), (N, OH, OW)


def conv_im2col(x, p, stride, pad, relu):
    a, (N, OH, OW) = _im2col(x.astype(jnp.bfloat16), p["k"], stride, pad)
    out = matmul_bias(a, p["w"], p["bias"], relu=relu)
    return out.reshape(N, OH, OW, p["np"])


def conv1x1(x, p, stride=1, relu=True, residual=None):
    if stride > 1:
        x = x[:, ::stride, ::stride, :]
    N, H, W, C = x.shape
    a = x.reshape(N * H * W, C)
    r = residual.reshape(N * H * W, p["np"]) if residual is not None else None
    out = matmul_bias(a, p["w"], p["bias"], relu=relu, residual=r)
    return out.reshape(N, H, W, p["np"])


# ---------------------------- parameter setup -------------------------------

def _conv_bn_params(key, cin, cout, k, *, cin_pad=True, layout="flat"):
    """Conv + folded BatchNorm.  The BN scale (gamma / sqrt(var+eps)) is folded
    into the conv weight; only the bias survives into the kernel epilogue.
    Weights are zero-padded to 128 multiples on both channel axes so the
    network can carry channel-padded activations with no pad/slice glue."""
    std = (2.0 / (cin * k * k)) ** 0.5
    w = jax.random.normal(key, (k, k, cin, cout), jnp.float32) * std
    # Fresh BatchNorm statistics: gamma=1, beta=0, mean=0, var=1, eps=1e-5.
    eps = 1e-5
    gamma = jnp.ones((cout,), jnp.float32)
    beta = jnp.zeros((cout,), jnp.float32)
    mean = jnp.zeros((cout,), jnp.float32)
    var = jnp.ones((cout,), jnp.float32)
    scale = gamma / jnp.sqrt(var + eps)
    bias = beta - mean * scale
    w = w * scale                                      # fold BN scale into weights
    cin_p = _ru(cin, 128) if cin_pad else cin
    cout_p = _ru(cout, 128)
    wp = jnp.zeros((k, k, cin_p, cout_p), jnp.float32)
    wp = wp.at[:, :, :cin, :cout].set(w)
    bias_p = jnp.zeros((1, cout_p), jnp.float32).at[0, :cout].set(bias)
    if layout == "taps":                               # (9, Cin_p, Cout_p) for conv3x3_s1
        w_out = wp.reshape(k * k, cin_p, cout_p).astype(jnp.bfloat16)
    else:                                              # flat (Kp, Cout_p) for im2col / 1x1
        kk = k * k * cin_p
        kp = _ru(kk, 128)
        w_flat = wp.reshape(kk, cout_p)
        if kp != kk:
            w_flat = jnp.pad(w_flat, ((0, kp - kk), (0, 0)))
        w_out = w_flat.astype(jnp.bfloat16)
    return {"w": w_out, "bias": bias_p, "k": k, "cout": cout, "np": cout_p}


def make_resnet50_params(key, num_classes=2):
    keys = iter(jax.random.split(key, 80))
    params = {"conv1": _conv_bn_params(next(keys), 3, 64, 7,
                                       cin_pad=False, layout="flat")}
    layers = []
    cin = 64
    for planes, blocks, stride in ((64, 3, 1), (128, 4, 2), (256, 6, 2), (512, 3, 2)):
        layer = []
        for b in range(blocks):
            blk_cin = cin if b == 0 else planes * 4
            s = stride if b == 0 else 1
            blk = {
                "conv1": _conv_bn_params(next(keys), blk_cin, planes, 1),
                "conv2": _conv_bn_params(next(keys), planes, planes, 3,
                                         layout="flat" if s > 1 else "taps"),
                "conv3": _conv_bn_params(next(keys), planes, planes * 4, 1),
                "stride": s,
                "downsample": (_conv_bn_params(next(keys), blk_cin, planes * 4, 1)
                               if b == 0 else None),
            }
            layer.append(blk)
        layers.append(layer)
        cin = planes * 4
    params["layers"] = layers

    fc_in = 512 * 4
    ncp = _ru(num_classes, 128)
    fc_w = (jax.random.normal(next(keys), (fc_in, num_classes), jnp.float32)
            / (fc_in ** 0.5))
    params["fc_w"] = jnp.pad(fc_w, ((0, 0), (0, ncp - num_classes))).astype(jnp.bfloat16)
    params["fc_b"] = jnp.zeros((1, ncp), jnp.float32)
    params["num_classes"] = num_classes
    return params


# ------------------------------ forward pass --------------------------------

def bottleneck(x, blk):
    out = conv1x1(x, blk["conv1"], relu=True)
    if blk["stride"] == 1:
        out = conv3x3_s1(out, blk["conv2"], relu=True)
    else:
        out = conv_im2col(out, blk["conv2"], stride=blk["stride"], pad=1, relu=True)
    if blk["downsample"] is not None:
        identity = conv1x1(x, blk["downsample"], stride=blk["stride"], relu=False)
    else:
        identity = x
    # conv3 + BN + residual add + ReLU fused into a single matmul epilogue.
    return conv1x1(out, blk["conv3"], relu=True, residual=identity)


def resnet_classifier_forward(params, x_nchw):
    # PyTorch feeds NCHW; transpose once to NHWC bf16 for the kernels.
    x = jnp.transpose(x_nchw, (0, 2, 3, 1)).astype(jnp.bfloat16)
    x = conv_im2col(x, params["conv1"], stride=2, pad=3, relu=True)   # conv1+bn1+relu
    x = maxpool_3x3_s2_p1(x)                                          # maxpool
    for layer in params["layers"]:                                    # layer1..layer4
        for blk in layer:
            x = bottleneck(x, blk)
    return gap_fc(x, params["fc_w"], params["fc_b"], params["num_classes"])


if __name__ == "__main__":
    # NCHW input like the PyTorch module: batch=2, channels=3, spatial=64.
    x = jax.random.normal(jax.random.PRNGKey(0), (2, 3, 64, 64), jnp.float32)
    params = make_resnet50_params(jax.random.PRNGKey(1), num_classes=2)
    logits = resnet_classifier_forward(params, x)
    logits = jax.block_until_ready(logits)
    assert logits.shape == (2, 2)
    assert bool(jnp.all(jnp.isfinite(logits)))
    print("KERNEL_OK")
</pallas_src>

<mosaic_0001>
module attributes {stable_mosaic.version = 11 : i64} {
  func.func @_matmul_bias_kernel(%arg0: i32, %arg1: i32, %arg2: memref<512x256xbf16, #tpu.memory_space<vmem>>, %arg3: memref<256x128xbf16, #tpu.memory_space<vmem>>, %arg4: memref<1x128xf32, #tpu.memory_space<vmem>>, %arg5: memref<512x128xbf16, #tpu.memory_space<vmem>>) attributes {dimension_semantics = [#tpu.dimension_semantics<parallel>, #tpu.dimension_semantics<parallel>], iteration_bounds = array<i64: 4, 1>, scalar_prefetch = 0 : i64, scratch_operands = 0 : i64, tpu.core_type = #tpu.core_type<tc>, window_params = [{transform_indices = @transform_0, window_bounds = array<i64: 512, 256>}, {transform_indices = @transform_1, window_bounds = array<i64: 256, 128>}, {transform_indices = @transform_2, window_bounds = array<i64: 1, 128>}, {transform_indices = @transform_3, window_bounds = array<i64: 512, 128>}]} {
    %c0 = arith.constant 0 : index
    %c0_0 = arith.constant 0 : index
    %0 = vector.load %arg2[%c0, %c0_0] : memref<512x256xbf16, #tpu.memory_space<vmem>>, vector<512x256xbf16>
    %c0_1 = arith.constant 0 : index
    %c0_2 = arith.constant 0 : index
    %1 = vector.load %arg3[%c0_1, %c0_2] : memref<256x128xbf16, #tpu.memory_space<vmem>>, vector<256x128xbf16>
    %cst = arith.constant dense<0.000000e+00> : vector<512x128xf32>
    %2 = tpu.matmul %0, %1, %cst {dimension_numbers = #tpu.dot_dimension_numbers<[1], [0], [0], [1], [0, 0, 1, 1], [], []>} : vector<512x256xbf16>, vector<256x128xbf16>, vector<512x128xf32> -> vector<512x128xf32>
    %c0_3 = arith.constant 0 : index
    %c0_4 = arith.constant 0 : index
    %3 = vector.load %arg4[%c0_3, %c0_4] : memref<1x128xf32, #tpu.memory_space<vmem>>, vector<1x128xf32>
    %4 = vector.broadcast %3 : vector<1x128xf32> to vector<512x128xf32>
    %5 = arith.addf %2, %4 : vector<512x128xf32>
    %cst_5 = arith.constant 0.000000e+00 : f32
    %6 = vector.broadcast %cst_5 : f32 to vector<512x128xf32>
    %7 = arith.maximumf %5, %6 : vector<512x128xf32>
    %8 = arith.truncf %7 : vector<512x128xf32> to vector<512x128xbf16>
    %c0_6 = arith.constant 0 : index
    %c0_7 = arith.constant 0 : index
    %9 = vector.load %arg5[%c0_6, %c0_7] : memref<512x128xbf16, #tpu.memory_space<vmem>>, vector<512x128xbf16>
    tpu.vector_store %arg5[%c0_6, %c0_7], %8 {strides = array<i32>} : memref<512x128xbf16, #tpu.memory_space<vmem>>, vector<512x128xbf16>,
    return
  }
  func.func @transform_0(%arg0: i32, %arg1: i32) -> (i32, i32) {
    %c0_i32 = arith.constant 0 : i32
    %c0_i32_0 = arith.constant 0 : i32
    return %arg0, %c0_i32 : i32, i32
  }
  func.func @transform_1(%arg0: i32, %arg1: i32) -> (i32, i32) {
    %c0_i32 = arith.constant 0 : i32
    %c0_i32_0 = arith.constant 0 : i32
    return %c0_i32, %arg1 : i32, i32
  }
  func.func @transform_2(%arg0: i32, %arg1: i32) -> (i32, i32) {
    %c0_i32 = arith.constant 0 : i32
    %c0_i32_0 = arith.constant 0 : i32
    return %c0_i32, %arg1 : i32, i32
  }
  func.func @transform_3(%arg0: i32, %arg1: i32) -> (i32, i32) {
    %c0_i32 = arith.constant 0 : i32
    return %arg0, %arg1 : i32, i32
  }
}

</mosaic_0001>

<bundles_post_ra>
// kernel: tpu_custom_call.1
= control target key start
LH: loop header
LB: loop body
LE: loop exit
PB: predicated region body
PF: predicated region fallthrough
CT: control target
= control target key end

     0   :  { %s2682_s0 = inlined_call_operand.hbm [shape: bf16[2048,256], index: 0, kind: input, shape index: {}]   ;;  %s2683_s1 = inlined_call_operand.hbm [shape: bf16[256,128], index: 1, kind: input, shape index: {}]   ;;  %s2684_s2 = inlined_call_operand.vmem [shape: f32[1,128], index: 2, kind: input, shape index: {}]   ;;  %s2685_s3 = inlined_call_operand.hbm [shape: bf16[2048,128], index: 3, kind: output, shape index: {}]  }
   0x1   :  { %2686 = sst [smem:[#allocation11_spill]] %s2683_s1 }
   0x2   :  { %8 = vsyncpa [#allocation3], 0 }
   0x3   :  { %10 = vsyncpa [#allocation3 + $0x1], 0 }
   0x4   :  { %11 = vsyncpa [#allocation6], 0 }
   0x5   :  { %12 = vsyncpa [#allocation4], 0 }
   0x6   :  { %14 = vsyncpa [#allocation4 + $0x1], 0  ;;  %s2300_s12 = smov 0   ;;  %s2302_s13 = smov 0  }
   0x7   :  { %s2304_s14 = smov 0   ;;  %s2306_s15 = smov 0  }
   0x8   :  { %s2308_s16 = smov 0   ;;  %s2310_s17 = smov 0  }
   0x9 LB: > { %s1416_s18 = sadd.s32 4294967295, %s2271_s17   ;;  %s1417_s19 = sadd.s32 4294967294, %s2271_s17   ;;  %s2271_s17 = sphi %s2310_s17, %s20_s17   ;;  %s2267_s16 = sphi %s2308_s16, %s2699_s16   ;;  %s2263_s15 = sphi %s2306_s15, %s2698_s15   ;;  %s2259_s14 = sphi %s2304_s14, %s2697_s14   ;;  %s2255_s13 = sphi %s2302_s13, %s2696_s13   ;;  %s2251_s12 = sphi %s2300_s12, %s2695_s12  }
   0xa   : > { %p52_p0 = scmp.ne.s32.totalorder %s2255_s13, %s2251_s12  ;;  %p2334_p1 = scmp.eq.s32.totalorder %s1416_s18, 0 }
   0xb   : > { %p2338_p2 = scmp.eq.s32.totalorder %s1416_s18, 3  ;;  %p136_p3 = scmp.eq.s32.totalorder %s1417_s19, 3 }
   0xc   : > { %p2344_p4 = por %p2334_p1, %p52_p0  ;;  %p1418_p5 = scmp.ge.s32.totalorder %s2271_s17, 1 }
   0xd   : > { %p2349_p6 = por %p136_p3, %p52_p0  ;;  %p143_p7 = scmp.lt.s32.totalorder %s2271_s17, 5 }
   0xe   : > { %s2691_s1 = sld [smem:[#allocation11_spill]]  ;;  %s2273_s28 = smov [#allocation5]  }
   0xf   : > { %p2357_p8 = pnand %p1418_p5, %p143_p7  ;;  %s158_s29 = sshll.u32 %s2273_s28, 4  ;;  %s159_s29 = int_to_ptr.vmem [resolvable:$true] %s158_s29 }
  0x10   : > { %s2274_s30 = smov 64   ;;  %s2275_s4 = smov 4  }
  0x11   : > { %p2053_p9 = pneg %p2357_p8  ;;  %s32_s5 = sadd.s32 1, %s2267_s16 }
  0x12   : > { %p34_p11 = scmp.ge.s32.totalorder %s32_s5, 4  ;;  %s39_s6 = sadd.s32 1, %s2259_s14 }
  0x13   : > { %p2054_p10 = pnand %p2053_p9, %p2334_p1  ;;  %p46_p12 = scmp.ne.s32.totalorder %s2259_s14, %s2255_s13 }
  0x14   : > { %s156_s26 = sshll.u32 %s2691_s1, 4  ;;  %p47_p13 = scmp.eq.s32.totalorder %s2271_s17, 0  ;;  %s157_s26 = int_to_ptr.hbm [resolvable:$true] %s156_s26 }
  0x15   : > { %2056 = dma.hbm_to_vmem [thread:$0]  (!%p2054_p10), %s157_s26, 2048, %s159_s29, [#allocation6], %s2274_s30, %s2274_s30, %s2275_s4  }
  0x16   : > { %s2701_s5 = smov (%p34_p11, %s32_s5), 0  ;;  %p2372_p0 = por %p47_p13, %p46_p12 }
  0x17   : > { %p2378_p3 = por %p2338_p2, %p46_p12  ;;  %s36_s9 = ssub.s32 %s2267_s16, %s2701_s5 }
  0x18   : > { %p2066_p5 = scmp.lt.s32.totalorder %s2271_s17, 4  ;;  %p37_p7 = scmp.eq.s32.totalorder %s36_s9, 0 }
  0x19   : > { %s178_s10 = sand.u32 1, %s2259_s14   ;;  %s1756_s19 = sshll.u32 %s2267_s16, 9 }
  0x1a   : > { %s1422_s11 = sshll.u32 %s178_s10, 9  ;;  %s188_s26 = scalar_lea.hbm %s2682_s0, %s1756_s19 }
  0x1b   : > { %s2387_s18 = scalar_select %p37_p7, %s2259_s14, %s39_s6  }
  0x1c   : > { %s182_s28 = scalar_lea.vmem [#allocation2], %s1422_s11  ;;  %s189_s21 = sshll.u32 %s188_s26, 4  ;;  %s190_s21 = int_to_ptr.hbm [resolvable:$true] %s189_s21 }
  0x1d   : > { %s191_s29 = sshll.u32 %s182_s28, 4  ;;  %p2058_p2 = pnand %p2066_p5, %p2372_p0  ;;  %s192_s29 = int_to_ptr.vmem [resolvable:$true] %s191_s29 }
  0x1e   : > { %s179_s30 = scalar_lea.sflag [#allocation3], %s178_s10  ;;  %s2276_s4 = smov 128  }
  0x1f   : > { %s2277_s1 = smov 8   ;;  %203 = sbr.rel (%p2357_p8) target bundleno = 463 (0x1cf), region = 32 }
  0x20   : > { %2060 = dma.hbm_to_vmem [thread:$0]  (!%p2058_p2), %s190_s21, 8192, %s192_s29, %s179_s30, %s2276_s4, %s2276_s4, %s2277_s1  }
  0x21   : > { %s2398_s6 = sand.u32 (!%p2357_p8), 1, %s2255_s13  }
  0x22   : > { %s1427_s9 = sshll.u32 (!%p2357_p8), %s2398_s6, 9  ;;  %s206_s11 = scalar_lea.sflag (!%p2357_p8), [#allocation3], %s2398_s6 }
  0x23   : > { %s2402_s19 = scalar_lea.vmem (!%p2357_p8), [#allocation2], %s1427_s9 }
  0x24   : > { %2238 = dma.done.wait (%p2344_p4), %s206_s11, 8192  }
  0x25   : > { %2240 = vsyncadd (%p2344_p4), %s206_s11, 4294959104 }
  0x26   : > { %2242 = dma.done.wait (%p2334_p1), [#allocation6], 2048  }
  0x27   : > { %2244 = vsyncadd (%p2334_p1), [#allocation6], 4294965248  ;;  %v1828_v0 = vld [vmem:[#allocation5 + $0x38] sm:$0xff]  ;;  %v1827_v2 = vld [vmem:[#allocation5 + $0x30] sm:$0xff]  ;;  %s1429_s22 = sshll.u32 %s2398_s6, 8  ;;  %s1837_s7 = sshll.u32 %s2263_s15, 8 }
  0x28   : > { %v1836_v1 = vld [vmem:[#allocation5 + $0x78] sm:$0xff]  ;;  %762 = vmatpush.bf16.msra.mxu0 %v1828_v0  ;;  %2029 = vmatpush.bf16.msra.mxu2 %v1828_v0  ;;  %v1835_v3 = vld [vmem:[#allocation5 + $0x70] sm:$0xff]  ;;  %v1826_v4 = vld [vmem:[#allocation5 + $0x28] sm:$0xff]  ;;  %s2502_s27 = scalar_lea.vmem [#allocation7], %s1429_s22  ;;  %s1305_s25 = scalar_lea.hbm %s2685_s3, %s1837_s7 }
  0x29   : > { %931 = vmatpush.bf16.msra.mxu1 %v1836_v1  ;;  %2037 = vmatpush.bf16.msra.mxu3 %v1836_v1  ;;  %v1834_v5 = vld [vmem:[#allocation5 + $0x68] sm:$0xff]  ;;  %v1825_v6 = vld [vmem:[#allocation5 + $0x20] sm:$0xff]  ;;  %v1824_v8 = vld [vmem:[#allocation5 + $0x18] sm:$0xff]  ;;  %s1306_s26 = sshll.u32 %s2502_s27, 4  ;;  %s1308_s28 = sshll.u32 %s1305_s25, 4  ;;  %s1307_s26 = int_to_ptr.vmem [resolvable:$true] %s1306_s26  ;;  %s1309_s28 = int_to_ptr.hbm [resolvable:$true] %s1308_s28 }
  0x2a   : > { %v1833_v7 = vld [vmem:[#allocation5 + $0x60] sm:$0xff]  ;;  %v1832_v9 = vld [vmem:[#allocation5 + $0x58] sm:$0xff]  ;;  %v1823_v10 = vld [vmem:[#allocation5 + $0x10] sm:$0xff]  ;;  %s1293_s15 = scalar_lea.sflag [#allocation4], %s2398_s6  ;;  %s2199_s29 = sshra.s32 %s1309_s28, 4  ;;  %s2200_s29 = int_to_ptr.hbm [resolvable:$true] %s2199_s29 }
  0x2b   : > { %v1831_v11 = vld [vmem:[#allocation5 + $0x50] sm:$0xff]  ;;  %v1822_v12 = vld [vmem:[#allocation5 + $0x8] sm:$0xff]  ;;  %v1821_v14 = vld [vmem:[#allocation5] sm:$0xff]  ;;  %s2201_s21 = scalar_lea.hbm %s2200_s29, 256  ;;  %s2205_s9 = scalar_lea.hbm %s2685_s3, 1024 }
  0x2c   : > { %763 = vmatpush.bf16.msra.mxu0 %v1827_v2  ;;  %2030 = vmatpush.bf16.msra.mxu2 %v1827_v2  ;;  %v1830_v13 = vld [vmem:[#allocation5 + $0x48] sm:$0xff]  ;;  %v1829_v15 = vld [vmem:[#allocation5 + $0x40] sm:$0xff]  ;;  %v1440_v28 = vld [vmem:[%s2402_s19 + $0x10] sm:$0xf]  ;;  %p2202_p1 = scmp.ne.s32.totalorder %s2200_s29, %s2201_s21  ;;  %p2206_p9 = scmp.lt.s32.totalorder %s2200_s29, %s2685_s3 }
  0x2d   : > { %932 = vmatpush.bf16.msra.mxu1 %v1835_v3  ;;  %2038 = vmatpush.bf16.msra.mxu3 %v1835_v3  ;;  %v1432_v16 = vld [vmem:[%s2402_s19] sm:$0xf]  ;;  %v1758_v17 = vld [vmem:[%s2402_s19 + $0x4] sm:$0xf0]  ;;  %v1757_v20 = vld [vmem:[%s2402_s19 + $0x4] sm:$0xf]  ;;  %p2207_p10 = scmp.lt.s32.totalorder %s2205_s9, %s2201_s21 }
  0x2e   : > { %v1560_v18 = vld [vmem:[%s2402_s19 + $0x100] sm:$0xf]  ;;  %v1790_v19 = vld [vmem:[%s2402_s19 + $0x104] sm:$0xf0]  ;;  %v1434_v21 = vld [vmem:[%s2402_s19 + $0x8] sm:$0xf0]  ;;  %v1433_v24 = vor.u32 %v1758_v17, %v1432_v16  ;;  %p2203_p4 = pnand %p2202_p1, %p2378_p3 }
  0x2f   : > { %v1789_v22 = vld [vmem:[%s2402_s19 + $0x104] sm:$0xf]  ;;  %v1562_v23 = vld [vmem:[%s2402_s19 + $0x108] sm:$0xf0]  ;;  %v1561_v25 = vor.u32 %v1790_v19, %v1560_v18  ;;  %v1437_v26 = vor.u32 %v1757_v20, %v1434_v21  ;;  %v1760_v29 = vld [vmem:[%s2402_s19 + $0x14] sm:$0xf0]  ;;  %p2208_p11 = por %p2207_p10, %p2206_p9 }
  0x30   : > { %764 = vmatpush.bf16.msra.mxu0 %v1826_v4  ;;  %2031 = vmatpush.bf16.msra.mxu2 %v1826_v4  ;;  %v1565_v27 = vor.u32 %v1789_v22, %v1562_v23  ;;  %v1568_v30 = vld [vmem:[%s2402_s19 + $0x110] sm:$0xf]  ;;  %v1792_v31 = vld [vmem:[%s2402_s19 + $0x114] sm:$0xf0]  ;;  %v1759_v32 = vld [vmem:[%s2402_s19 + $0x14] sm:$0xf]  ;;  %v1441_v36 = vor.u32 %v1760_v29, %v1440_v28  ;;  %p2204_p8 = pneg %p2203_p4 }
  0x31   : > { %933 = vmatpush.bf16.msra.mxu1 %v1834_v5  ;;  %2039 = vmatpush.bf16.msra.mxu3 %v1834_v5  ;;  %v1442_v33 = vld [vmem:[%s2402_s19 + $0x18] sm:$0xf0]  ;;  %v1791_v34 = vld [vmem:[%s2402_s19 + $0x114] sm:$0xf]  ;;  %v1569_v37 = vor.u32 %v1792_v31, %v1568_v30  ;;  %v1448_v40 = vld [vmem:[%s2402_s19 + $0x20] sm:$0xf] }
  0x32   : > { %v1570_v35 = vld [vmem:[%s2402_s19 + $0x118] sm:$0xf0]  ;;  %v1445_v38 = vor.u32 %v1759_v32, %v1442_v33  ;;  %v1762_v41 = vld [vmem:[%s2402_s19 + $0x24] sm:$0xf0]  ;;  %v1576_v42 = vld [vmem:[%s2402_s19 + $0x120] sm:$0xf]  ;;  %p2209_p12 = pnand %p2208_p11, %p2204_p8 }
  0x33   : > { %v1573_v39 = vor.u32 %v1791_v34, %v1570_v35  ;;  %v1794_v43 = vld [vmem:[%s2402_s19 + $0x124] sm:$0xf0]  ;;  %v1761_v44 = vld [vmem:[%s2402_s19 + $0x24] sm:$0xf]  ;;  %v1450_v45 = vld [vmem:[%s2402_s19 + $0x28] sm:$0xf0]  ;;  %v1449_v48 = vor.u32 %v1762_v41, %v1448_v40 }
  0x34   : > { %765 = vmatpush.bf16.msra.mxu0 %v1825_v6  ;;  %2032 = vmatpush.bf16.msra.mxu2 %v1825_v6  ;;  %v1793_v46 = vld [vmem:[%s2402_s19 + $0x124] sm:$0xf]  ;;  %v1578_v47 = vld [vmem:[%s2402_s19 + $0x128] sm:$0xf0]  ;;  %v1577_v49 = vor.u32 %v1794_v43, %v1576_v42  ;;  %v1453_v50 = vor.u32 %v1761_v44, %v1450_v45  ;;  %v1456_v52 = vld [vmem:[%s2402_s19 + $0x30] sm:$0xf] }
  0x35   : > { %934 = vmatpush.bf16.msra.mxu1 %v1833_v7  ;;  %2040 = vmatpush.bf16.msra.mxu3 %v1833_v7  ;;  %v1581_v51 = vor.u32 %v1793_v46, %v1578_v47  ;;  %v1764_v53 = vld [vmem:[%s2402_s19 + $0x34] sm:$0xf0]  ;;  %v1584_v54 = vld [vmem:[%s2402_s19 + $0x130] sm:$0xf]  ;;  %v1763_v56 = vld [vmem:[%s2402_s19 + $0x34] sm:$0xf] }
  0x36   : > { %v1796_v55 = vld [vmem:[%s2402_s19 + $0x134] sm:$0xf0]  ;;  %v1458_v57 = vld [vmem:[%s2402_s19 + $0x38] sm:$0xf0]  ;;  %v1795_v58 = vld [vmem:[%s2402_s19 + $0x134] sm:$0xf]  ;;  %v1457_v60 = vor.u32 %v1764_v53, %v1456_v52 }
  0x37   : > { %v1586_v59 = vld [vmem:[%s2402_s19 + $0x138] sm:$0xf0]  ;;  %v1585_v61 = vor.u32 %v1796_v55, %v1584_v54  ;;  %v1461_v62 = vor.u32 %v1763_v56, %v1458_v57  ;;  %v1464_v0 = vld [vmem:[%s2402_s19 + $0x40] sm:$0xf]  ;;  %v1766_v1 = vld [vmem:[%s2402_s19 + $0x44] sm:$0xf0] }
  0x38   : > { %766 = vmatpush.bf16.msra.mxu0 %v1824_v8  ;;  %2033 = vmatpush.bf16.msra.mxu2 %v1824_v8  ;;  %v1589_v63 = vor.u32 %v1795_v58, %v1586_v59  ;;  %v1592_v2 = vld [vmem:[%s2402_s19 + $0x140] sm:$0xf]  ;;  %v1798_v3 = vld [vmem:[%s2402_s19 + $0x144] sm:$0xf0]  ;;  %v1765_v4 = vld [vmem:[%s2402_s19 + $0x44] sm:$0xf]  ;;  %v1465_v8 = vor.u32 %v1766_v1, %v1464_v0 }
  0x39   : > { %935 = vmatpush.bf16.msra.mxu1 %v1832_v9  ;;  %2041 = vmatpush.bf16.msra.mxu3 %v1832_v9  ;;  %v1466_v5 = vld [vmem:[%s2402_s19 + $0x48] sm:$0xf0]  ;;  %v1797_v6 = vld [vmem:[%s2402_s19 + $0x144] sm:$0xf]  ;;  %v1593_v9 = vor.u32 %v1798_v3, %v1592_v2  ;;  %v1767_v16 = vld [vmem:[%s2402_s19 + $0x54] sm:$0xf] }
  0x3a   : > { %v1594_v7 = vld [vmem:[%s2402_s19 + $0x148] sm:$0xf0]  ;;  %v1474_v17 = vld [vmem:[%s2402_s19 + $0x58] sm:$0xf0]  ;;  %v1799_v18 = vld [vmem:[%s2402_s19 + $0x154] sm:$0xf] }
  0x3b   : > { %v1602_v19 = vld [vmem:[%s2402_s19 + $0x158] sm:$0xf0]  ;;  %v1477_v22 = vor.u32 %v1767_v16, %v1474_v17  ;;  %v1769_v28 = vld [vmem:[%s2402_s19 + $0x64] sm:$0xf]  ;;  %v1482_v29 = vld [vmem:[%s2402_s19 + $0x68] sm:$0xf0] }
  0x3c   : > { %767 = vmatpush.bf16.msra.mxu0 %v1823_v10  ;;  %2034 = vmatpush.bf16.msra.mxu2 %v1823_v10  ;;  %v1469_v10 = vor.u32 %v1765_v4, %v1466_v5  ;;  %v1605_v23 = vor.u32 %v1799_v18, %v1602_v19  ;;  %v1801_v30 = vld [vmem:[%s2402_s19 + $0x164] sm:$0xf]  ;;  %v1610_v31 = vld [vmem:[%s2402_s19 + $0x168] sm:$0xf0]  ;;  %v1485_v34 = vor.u32 %v1769_v28, %v1482_v29  ;;  %v1771_v40 = vld [vmem:[%s2402_s19 + $0x74] sm:$0xf] }
  0x3d   : > { %936 = vmatpush.bf16.msra.mxu1 %v1831_v11  ;;  %2042 = vmatpush.bf16.msra.mxu3 %v1831_v11  ;;  %v1597_v11 = vor.u32 %v1797_v6, %v1594_v7  ;;  %v1613_v35 = vor.u32 %v1801_v30, %v1610_v31  ;;  %v1490_v41 = vld [vmem:[%s2402_s19 + $0x78] sm:$0xf0]  ;;  %v1803_v42 = vld [vmem:[%s2402_s19 + $0x174] sm:$0xf]  ;;  %v1773_v52 = vld [vmem:[%s2402_s19 + $0x84] sm:$0xf] }
  0x3e   : > { %v1618_v43 = vld [vmem:[%s2402_s19 + $0x178] sm:$0xf0]  ;;  %v1493_v46 = vor.u32 %v1771_v40, %v1490_v41  ;;  %v1498_v53 = vld [vmem:[%s2402_s19 + $0x88] sm:$0xf0]  ;;  %v1805_v54 = vld [vmem:[%s2402_s19 + $0x184] sm:$0xf] }
  0x3f   : > { %v1621_v47 = vor.u32 %v1803_v42, %v1618_v43  ;;  %v1626_v55 = vld [vmem:[%s2402_s19 + $0x188] sm:$0xf0]  ;;  %v1501_v59 = vor.u32 %v1773_v52, %v1498_v53  ;;  %v1807_v16 = vld [vmem:[%s2402_s19 + $0x194] sm:$0xf]  ;;  %v1634_v17 = vld [vmem:[%s2402_s19 + $0x198] sm:$0xf0] }
  0x40   : > { %768 = vmatpush.bf16.msra.mxu0 %v1822_v12  ;;  %2035 = vmatpush.bf16.msra.mxu2 %v1822_v12  ;;  %v1472_v12 = vld [vmem:[%s2402_s19 + $0x50] sm:$0xf]  ;;  %v1512_v42 = vld [vmem:[%s2402_s19 + $0xa0] sm:$0xf]  ;;  %v1778_v43 = vld [vmem:[%s2402_s19 + $0xa4] sm:$0xf0] }
  0x41   : > { %937 = vmatpush.bf16.msra.mxu1 %v1830_v13  ;;  %2043 = vmatpush.bf16.msra.mxu3 %v1830_v13  ;;  %v1768_v13 = vld [vmem:[%s2402_s19 + $0x54] sm:$0xf0]  ;;  %v1513_v53 = vor.u32 %v1778_v43, %v1512_v42 }
  0x42   : > { %v1473_v20 = vor.u32 %v1768_v13, %v1472_v12  ;;  %v1775_v12 = vld [vmem:[%s2402_s19 + $0x94] sm:$0xf]  ;;  %v1506_v13 = vld [vmem:[%s2402_s19 + $0x98] sm:$0xf0] }
  0x44   : > { %769 = vmatpush.bf16.msra.mxu0 %v1821_v14  ;;  %2036 = vmatpush.bf16.msra.mxu2 %v1821_v14  ;;  %v1600_v14 = vld [vmem:[%s2402_s19 + $0x150] sm:$0xf] }
  0x45   : > { %938 = vmatpush.bf16.msra.mxu1 %v1829_v15  ;;  %2044 = vmatpush.bf16.msra.mxu3 %v1829_v15  ;;  %v1800_v15 = vld [vmem:[%s2402_s19 + $0x154] sm:$0xf0] }
  0x46   : > { %v1601_v21 = vor.u32 %v1800_v15, %v1600_v14 }
  0x47   : > { %770 = vmatmul.bf16.vlgmr.msra.gmra.mxu0 %v1433_v24  ;;  %850 = vmatmul.bf16.vlgmr.msra.gmra.mxu2 %v1561_v25  ;;  %v1480_v24 = vld [vmem:[%s2402_s19 + $0x60] sm:$0xf]  ;;  %v1770_v25 = vld [vmem:[%s2402_s19 + $0x64] sm:$0xf0] }
  0x48   : > { %939 = vmatmul.bf16.vlgmr.msra.gmra.mxu1 %v1437_v26  ;;  %1019 = vmatmul.bf16.vlgmr.msra.gmra.mxu3 %v1565_v27  ;;  %v1608_v26 = vld [vmem:[%s2402_s19 + $0x160] sm:$0xf]  ;;  %v1802_v27 = vld [vmem:[%s2402_s19 + $0x164] sm:$0xf0]  ;;  %v1481_v32 = vor.u32 %v1770_v25, %v1480_v24 }
  0x49   : > { %v1609_v33 = vor.u32 %v1802_v27, %v1608_v26  ;;  %v1509_v26 = vor.u32 %v1775_v12, %v1506_v13  ;;  %v1637_v27 = vor.u32 %v1807_v16, %v1634_v17  ;;  %v1520_v13 = vld [vmem:[%s2402_s19 + $0xb0] sm:$0xf]  ;;  %v1812_v16 = vld [vmem:[%s2402_s19 + $0x1b4] sm:$0xf0]  ;;  %v1779_v17 = vld [vmem:[%s2402_s19 + $0xb4] sm:$0xf] }
  0x57   : > { %775 = vmatmul.bf16.gmra.mxu0 %v1441_v36  ;;  %855 = vmatmul.bf16.gmra.mxu2 %v1569_v37  ;;  %v1488_v36 = vld [vmem:[%s2402_s19 + $0x70] sm:$0xf]  ;;  %v1772_v37 = vld [vmem:[%s2402_s19 + $0x74] sm:$0xf0] }
  0x58   : > { %944 = vmatmul.bf16.gmra.mxu1 %v1445_v38  ;;  %1024 = vmatmul.bf16.gmra.mxu3 %v1573_v39  ;;  %v1616_v38 = vld [vmem:[%s2402_s19 + $0x170] sm:$0xf]  ;;  %v1804_v39 = vld [vmem:[%s2402_s19 + $0x174] sm:$0xf0]  ;;  %v1489_v44 = vor.u32 %v1772_v37, %v1488_v36 }
  0x59   : > { %v1617_v45 = vor.u32 %v1804_v39, %v1616_v38 }
  0x67   : > { %780 = vmatmul.bf16.gmra.mxu0 %v1449_v48  ;;  %860 = vmatmul.bf16.gmra.mxu2 %v1577_v49  ;;  %v1496_v48 = vld [vmem:[%s2402_s19 + $0x80] sm:$0xf]  ;;  %v1774_v49 = vld [vmem:[%s2402_s19 + $0x84] sm:$0xf0] }
  0x68   : > { %949 = vmatmul.bf16.gmra.mxu1 %v1453_v50  ;;  %1029 = vmatmul.bf16.gmra.mxu3 %v1581_v51  ;;  %v1624_v50 = vld [vmem:[%s2402_s19 + $0x180] sm:$0xf]  ;;  %v1806_v51 = vld [vmem:[%s2402_s19 + $0x184] sm:$0xf0]  ;;  %v1497_v56 = vor.u32 %v1774_v49, %v1496_v48 }
  0x69   : > { %v1625_v57 = vor.u32 %v1806_v51, %v1624_v50  ;;  %v1809_v50 = vld [vmem:[%s2402_s19 + $0x1a4] sm:$0xf]  ;;  %v1642_v51 = vld [vmem:[%s2402_s19 + $0x1a8] sm:$0xf0] }
  0x77   : > { %785 = vmatmul.bf16.gmra.mxu0 %v1457_v60  ;;  %865 = vmatmul.bf16.gmra.mxu2 %v1585_v61  ;;  %v1629_v60 = vor.u32 %v1805_v54, %v1626_v55  ;;  %v2487_v61 = vld [vmem:[%s2684_s2] ss:$0 sm:$0xff] }
  0x78   : > { %954 = vmatmul.bf16.gmra.mxu1 %v1461_v62  ;;  %1034 = vmatmul.bf16.gmra.mxu3 %v1589_v63 }
  0x87   : > { %790 = vmatmul.bf16.gmra.mxu0 %v1465_v8  ;;  %870 = vmatmul.bf16.gmra.mxu2 %v1593_v9  ;;  %v1504_v8 = vld [vmem:[%s2402_s19 + $0x90] sm:$0xf]  ;;  %v1776_v9 = vld [vmem:[%s2402_s19 + $0x94] sm:$0xf0] }
  0x88   : > { %959 = vmatmul.bf16.gmra.mxu1 %v1469_v10  ;;  %1039 = vmatmul.bf16.gmra.mxu3 %v1597_v11  ;;  %v1632_v10 = vld [vmem:[%s2402_s19 + $0x190] sm:$0xf]  ;;  %v1808_v11 = vld [vmem:[%s2402_s19 + $0x194] sm:$0xf0]  ;;  %v1505_v19 = vor.u32 %v1776_v9, %v1504_v8 }
  0x89   : > { %v1633_v24 = vor.u32 %v1808_v11, %v1632_v10 }
  0x97   : > { %795 = vmatmul.bf16.gmra.mxu0 %v1473_v20  ;;  %875 = vmatmul.bf16.gmra.mxu2 %v1601_v21 }
  0x98   : > { %964 = vmatmul.bf16.gmra.mxu1 %v1477_v22  ;;  %1044 = vmatmul.bf16.gmra.mxu3 %v1605_v23 }
  0xa7   : > { %800 = vmatmul.bf16.gmra.mxu0 %v1481_v32  ;;  %880 = vmatmul.bf16.gmra.mxu2 %v1609_v33 }
  0xa8   : > { %969 = vmatmul.bf16.gmra.mxu1 %v1485_v34  ;;  %1049 = vmatmul.bf16.gmra.mxu3 %v1613_v35 }
  0xb7   : > { %805 = vmatmul.bf16.gmra.mxu0 %v1489_v44  ;;  %885 = vmatmul.bf16.gmra.mxu2 %v1617_v45  ;;  %v1640_v44 = vld [vmem:[%s2402_s19 + $0x1a0] sm:$0xf]  ;;  %v1810_v45 = vld [vmem:[%s2402_s19 + $0x1a4] sm:$0xf0] }
  0xb8   : > { %974 = vmatmul.bf16.gmra.mxu1 %v1493_v46  ;;  %1054 = vmatmul.bf16.gmra.mxu3 %v1621_v47  ;;  %v1777_v46 = vld [vmem:[%s2402_s19 + $0xa4] sm:$0xf]  ;;  %v1514_v47 = vld [vmem:[%s2402_s19 + $0xa8] sm:$0xf0] }
  0xc4   : > { %v771_v58 = vpop.f32.mrf.mxu0 }
  0xc5   : > { %v940_v62 = vpop.f32.mrf.mxu1  ;;  %v772_v63 = vadd.f32 %v2487_v61, %v771_v58  ;;  %v1641_v58 = vor.u32 %v1810_v45, %v1640_v44 }
  0xc7   : > { %810 = vmatmul.bf16.gmra.mxu0 %v1497_v56  ;;  %890 = vmatmul.bf16.gmra.mxu2 %v1625_v57  ;;  %v941_v3 = vadd.f32 %v940_v62, %v772_v63  ;;  %v1645_v62 = vor.u32 %v1809_v50, %v1642_v51  ;;  %v1814_v50 = vld [vmem:[%s2402_s19 + $0x1c4] sm:$0xf0]  ;;  %v1781_v51 = vld [vmem:[%s2402_s19 + $0xc4] sm:$0xf] }
  0xc8   : > { %979 = vmatmul.bf16.gmra.mxu1 %v1501_v59  ;;  %1059 = vmatmul.bf16.gmra.mxu3 %v1629_v60  ;;  %v1517_v60 = vor.u32 %v1777_v46, %v1514_v47  ;;  %v1528_v47 = vld [vmem:[%s2402_s19 + $0xc0] sm:$0xf] }
  0xc9   : > { %v1100_v14 = vmax.f32 %v941_v3, 0.0 }
  0xca   : > { %v851_v0 = vpop.f32.mrf.mxu2 }
  0xcb   : > { %v1020_v1 = vpop.f32.mrf.mxu3  ;;  %v852_v6 = vadd.f32 %v2487_v61, %v851_v0 }
  0xcc   : > { %v773_v2 = vpop.f32.mrf.mxu0 }
  0xcd   : > { %v774_v4 = vadd.f32 %v2487_v61, %v773_v2  ;;  %v942_v5 = vpop.f32.mrf.mxu1  ;;  %v1021_v20 = vadd.f32 %v1020_v1, %v852_v6 }
  0xcf   : > { %v943_v7 = vadd.f32 %v942_v5, %v774_v4  ;;  %v1132_v30 = vmax.f32 %v1021_v20, 0.0 }
  0xd1   : > { %v1101_v15 = vmax.f32 %v943_v7, 0.0 }
  0xd2   : > { %v853_v18 = vpop.f32.mrf.mxu2 }
  0xd3   : > { %v1841_v21 = vpack.c.bf16 %v1101_v15, %v1100_v14  ;;  %v854_v22 = vadd.f32 %v2487_v61, %v853_v18  ;;  %v1022_v23 = vpop.f32.mrf.mxu3  ;;  %v1780_v14 = vld [vmem:[%s2402_s19 + $0xb4] sm:$0xf0]  ;;  %v1648_v15 = vld [vmem:[%s2402_s19 + $0x1b0] sm:$0xf]  ;;  %v1522_v18 = vld [vmem:[%s2402_s19 + $0xb8] sm:$0xf0] }
  0xd4   : > { %v776_v25 = vpop.f32.mrf.mxu0 }
  0xd5   : > { %1842 = vst [vmem:[%s2502_s27] sm:$0xff] %v1841_v21   ;;  %v1023_v28 = vadd.f32 %v1022_v23, %v854_v22  ;;  %v945_v29 = vpop.f32.mrf.mxu1  ;;  %v777_v33 = vadd.f32 %v2487_v61, %v776_v25  ;;  %v1811_v21 = vld [vmem:[%s2402_s19 + $0x1b4] sm:$0xf]  ;;  %v1650_v22 = vld [vmem:[%s2402_s19 + $0x1b8] sm:$0xf0] }
  0xd7   : > { %v1133_v31 = vmax.f32 %v1023_v28, 0.0  ;;  %815 = vmatmul.bf16.gmra.mxu0 %v1505_v19  ;;  %895 = vmatmul.bf16.gmra.mxu2 %v1633_v24  ;;  %v946_v37 = vadd.f32 %v945_v29, %v777_v33  ;;  %v1521_v24 = vor.u32 %v1780_v14, %v1520_v13  ;;  %v1649_v29 = vor.u32 %v1812_v16, %v1648_v15 }
  0xd8   : > { %984 = vmatmul.bf16.gmra.mxu1 %v1509_v26  ;;  %1064 = vmatmul.bf16.gmra.mxu3 %v1637_v27 }
  0xd9   : > { %v1921_v32 = vpack.c.bf16 %v1133_v31, %v1132_v30  ;;  %v1102_v48 = vmax.f32 %v946_v37, 0.0  ;;  %v1525_v31 = vor.u32 %v1779_v17, %v1522_v18  ;;  %v1536_v18 = vld [vmem:[%s2402_s19 + $0xd0] sm:$0xf] }
  0xda   : > { %v856_v34 = vpop.f32.mrf.mxu2 }
  0xdb   : > { %2013 = vst [vmem:[%s2502_s27 + $0x80] sm:$0xff] %v1921_v32   ;;  %v1025_v35 = vpop.f32.mrf.mxu3  ;;  %v857_v40 = vadd.f32 %v2487_v61, %v856_v34  ;;  %v1653_v32 = vor.u32 %v1811_v21, %v1650_v22  ;;  %v1816_v21 = vld [vmem:[%s2402_s19 + $0x1d4] sm:$0xf0]  ;;  %v1783_v22 = vld [vmem:[%s2402_s19 + $0xd4] sm:$0xf] }
  0xdc   : > { %v778_v36 = vpop.f32.mrf.mxu0 }
  0xdd   : > { %v779_v38 = vadd.f32 %v2487_v61, %v778_v36  ;;  %v947_v39 = vpop.f32.mrf.mxu1  ;;  %v1026_v54 = vadd.f32 %v1025_v35, %v857_v40 }
  0xdf   : > { %v948_v41 = vadd.f32 %v947_v39, %v779_v38  ;;  %v1134_v1 = vmax.f32 %v1026_v54, 0.0 }
  0xe1   : > { %v1103_v49 = vmax.f32 %v948_v41, 0.0 }
  0xe2   : > { %v858_v52 = vpop.f32.mrf.mxu2 }
  0xe3   : > { %v1846_v55 = vpack.c.bf16 %v1103_v49, %v1102_v48  ;;  %v859_v56 = vadd.f32 %v2487_v61, %v858_v52  ;;  %v1027_v57 = vpop.f32.mrf.mxu3  ;;  %v1782_v48 = vld [vmem:[%s2402_s19 + $0xc4] sm:$0xf0]  ;;  %v1656_v49 = vld [vmem:[%s2402_s19 + $0x1c0] sm:$0xf]  ;;  %v1530_v52 = vld [vmem:[%s2402_s19 + $0xc8] sm:$0xf0] }
  0xe4   : > { %v781_v59 = vpop.f32.mrf.mxu0 }
  0xe5   : > { %1998 = vst [vmem:[%s2502_s27 + $0x8] sm:$0xff] %v1846_v55   ;;  %v1028_v63 = vadd.f32 %v1027_v57, %v859_v56  ;;  %v950_v0 = vpop.f32.mrf.mxu1  ;;  %v782_v4 = vadd.f32 %v2487_v61, %v781_v59  ;;  %v1813_v55 = vld [vmem:[%s2402_s19 + $0x1c4] sm:$0xf]  ;;  %v1658_v56 = vld [vmem:[%s2402_s19 + $0x1c8] sm:$0xf0] }
  0xe7   : > { %v1135_v2 = vmax.f32 %v1028_v63, 0.0  ;;  %820 = vmatmul.bf16.gmra.mxu0 %v1513_v53  ;;  %900 = vmatmul.bf16.gmra.mxu2 %v1641_v58  ;;  %v951_v8 = vadd.f32 %v950_v0, %v782_v4  ;;  %v1529_v58 = vor.u32 %v1782_v48, %v1528_v47  ;;  %v1657_v0 = vor.u32 %v1814_v50, %v1656_v49 }
  0xe8   : > { %989 = vmatmul.bf16.gmra.mxu1 %v1517_v60  ;;  %1069 = vmatmul.bf16.gmra.mxu3 %v1645_v62 }
  0xe9   : > { %v1926_v3 = vpack.c.bf16 %v1135_v2, %v1134_v1  ;;  %v1104_v19 = vmax.f32 %v951_v8, 0.0  ;;  %v1533_v2 = vor.u32 %v1781_v51, %v1530_v52  ;;  %v1544_v52 = vld [vmem:[%s2402_s19 + $0xe0] sm:$0xf] }
  0xea   : > { %v861_v5 = vpop.f32.mrf.mxu2 }
  0xeb   : > { %2014 = vst [vmem:[%s2502_s27 + $0x88] sm:$0xff] %v1926_v3   ;;  %v1030_v6 = vpop.f32.mrf.mxu3  ;;  %v862_v11 = vadd.f32 %v2487_v61, %v861_v5  ;;  %v1661_v3 = vor.u32 %v1813_v55, %v1658_v56  ;;  %v1818_v55 = vld [vmem:[%s2402_s19 + $0x1e4] sm:$0xf0]  ;;  %v1785_v56 = vld [vmem:[%s2402_s19 + $0xe4] sm:$0xf] }
  0xec   : > { %v783_v7 = vpop.f32.mrf.mxu0 }
  0xed   : > { %v784_v9 = vadd.f32 %v2487_v61, %v783_v7  ;;  %v952_v10 = vpop.f32.mrf.mxu1  ;;  %v1031_v25 = vadd.f32 %v1030_v6, %v862_v11 }
  0xef   : > { %v953_v12 = vadd.f32 %v952_v10, %v784_v9  ;;  %v1136_v35 = vmax.f32 %v1031_v25, 0.0 }
  0xf1   : > { %v1105_v20 = vmax.f32 %v953_v12, 0.0 }
  0xf2   : > { %v863_v23 = vpop.f32.mrf.mxu2 }
  0xf3   : > { %v1851_v26 = vpack.c.bf16 %v1105_v20, %v1104_v19  ;;  %v864_v27 = vadd.f32 %v2487_v61, %v863_v23  ;;  %v1032_v28 = vpop.f32.mrf.mxu3  ;;  %v1784_v19 = vld [vmem:[%s2402_s19 + $0xd4] sm:$0xf0]  ;;  %v1664_v20 = vld [vmem:[%s2402_s19 + $0x1d0] sm:$0xf]  ;;  %v1538_v23 = vld [vmem:[%s2402_s19 + $0xd8] sm:$0xf0] }
  0xf4   : > { %v786_v30 = vpop.f32.mrf.mxu0 }
  0xf5   : > { %1999 = vst [vmem:[%s2502_s27 + $0x10] sm:$0xff] %v1851_v26   ;;  %v1033_v33 = vadd.f32 %v1032_v28, %v864_v27  ;;  %v955_v34 = vpop.f32.mrf.mxu1  ;;  %v787_v38 = vadd.f32 %v2487_v61, %v786_v30  ;;  %v1815_v26 = vld [vmem:[%s2402_s19 + $0x1d4] sm:$0xf]  ;;  %v1666_v27 = vld [vmem:[%s2402_s19 + $0x1d8] sm:$0xf0] }
  0xf7   : > { %v1137_v36 = vmax.f32 %v1033_v33, 0.0  ;;  %825 = vmatmul.bf16.gmra.mxu0 %v1521_v24  ;;  %905 = vmatmul.bf16.gmra.mxu2 %v1649_v29  ;;  %v956_v42 = vadd.f32 %v955_v34, %v787_v38  ;;  %v1537_v29 = vor.u32 %v1784_v19, %v1536_v18  ;;  %v1665_v34 = vor.u32 %v1816_v21, %v1664_v20 }
  0xf8   : > { %994 = vmatmul.bf16.gmra.mxu1 %v1525_v31  ;;  %1074 = vmatmul.bf16.gmra.mxu3 %v1653_v32 }
  0xf9   : > { %v1931_v37 = vpack.c.bf16 %v1137_v36, %v1136_v35  ;;  %v1106_v53 = vmax.f32 %v956_v42, 0.0  ;;  %v1541_v36 = vor.u32 %v1783_v22, %v1538_v23  ;;  %v1552_v23 = vld [vmem:[%s2402_s19 + $0xf0] sm:$0xf] }
  0xfa   : > { %v866_v39 = vpop.f32.mrf.mxu2 }
  0xfb   : > { %2015 = vst [vmem:[%s2502_s27 + $0x90] sm:$0xff] %v1931_v37   ;;  %v1035_v40 = vpop.f32.mrf.mxu3  ;;  %v867_v45 = vadd.f32 %v2487_v61, %v866_v39  ;;  %v1669_v37 = vor.u32 %v1815_v26, %v1666_v27  ;;  %v1820_v26 = vld [vmem:[%s2402_s19 + $0x1f4] sm:$0xf0]  ;;  %v1787_v27 = vld [vmem:[%s2402_s19 + $0xf4] sm:$0xf] }
  0xfc   : > { %v788_v41 = vpop.f32.mrf.mxu0 }
  0xfd   : > { %v789_v43 = vadd.f32 %v2487_v61, %v788_v41  ;;  %v957_v44 = vpop.f32.mrf.mxu1  ;;  %v1036_v59 = vadd.f32 %v1035_v40, %v867_v45 }
  0xff   : > { %v958_v46 = vadd.f32 %v957_v44, %v789_v43  ;;  %v1138_v6 = vmax.f32 %v1036_v59, 0.0 }
 0x101   : > { %v1107_v54 = vmax.f32 %v958_v46, 0.0 }
 0x102   : > { %v868_v57 = vpop.f32.mrf.mxu2 }
 0x103   : > { %v1856_v60 = vpack.c.bf16 %v1107_v54, %v1106_v53  ;;  %v869_v62 = vadd.f32 %v2487_v61, %v868_v57  ;;  %v1037_v63 = vpop.f32.mrf.mxu3  ;;  %v1786_v53 = vld [vmem:[%s2402_s19 + $0xe4] sm:$0xf0]  ;;  %v1672_v54 = vld [vmem:[%s2402_s19 + $0x1e0] sm:$0xf]  ;;  %v1546_v57 = vld [vmem:[%s2402_s19 + $0xe8] sm:$0xf0] }
 0x104   : > { %v791_v1 = vpop.f32.mrf.mxu0 }
 0x105   : > { %2000 = vst [vmem:[%s2502_s27 + $0x18] sm:$0xff] %v1856_v60   ;;  %v1038_v4 = vadd.f32 %v1037_v63, %v869_v62  ;;  %v960_v5 = vpop.f32.mrf.mxu1  ;;  %v792_v9 = vadd.f32 %v2487_v61, %v791_v1  ;;  %v1817_v60 = vld [vmem:[%s2402_s19 + $0x1e4] sm:$0xf]  ;;  %v1674_v62 = vld [vmem:[%s2402_s19 + $0x1e8] sm:$0xf0] }
 0x107   : > { %v1139_v7 = vmax.f32 %v1038_v4, 0.0  ;;  %830 = vmatmul.bf16.gmra.mxu0 %v1529_v58  ;;  %910 = vmatmul.bf16.gmra.mxu2 %v1657_v0  ;;  %v961_v13 = vadd.f32 %v960_v5, %v792_v9  ;;  %v1545_v0 = vor.u32 %v1786_v53, %v1544_v52  ;;  %v1673_v5 = vor.u32 %v1818_v55, %v1672_v54 }
 0x108   : > { %999 = vmatmul.bf16.gmra.mxu1 %v1533_v2  ;;  %1079 = vmatmul.bf16.gmra.mxu3 %v1661_v3 }
 0x109   : > { %v1936_v8 = vpack.c.bf16 %v1139_v7, %v1138_v6  ;;  %v1108_v24 = vmax.f32 %v961_v13, 0.0  ;;  %v1549_v7 = vor.u32 %v1785_v56, %v1546_v57 }
 0x10a   : > { %v871_v10 = vpop.f32.mrf.mxu2 }
 0x10b   : > { %2016 = vst [vmem:[%s2502_s27 + $0x98] sm:$0xff] %v1936_v8   ;;  %v1040_v11 = vpop.f32.mrf.mxu3  ;;  %v872_v16 = vadd.f32 %v2487_v61, %v871_v10  ;;  %v1677_v8 = vor.u32 %v1817_v60, %v1674_v62 }
 0x10c   : > { %v793_v12 = vpop.f32.mrf.mxu0 }
 0x10d   : > { %v794_v14 = vadd.f32 %v2487_v61, %v793_v12  ;;  %v962_v15 = vpop.f32.mrf.mxu1  ;;  %v1041_v30 = vadd.f32 %v1040_v11, %v872_v16 }
 0x10f   : > { %v963_v17 = vadd.f32 %v962_v15, %v794_v14  ;;  %v1140_v40 = vmax.f32 %v1041_v30, 0.0 }
 0x111   : > { %v1109_v25 = vmax.f32 %v963_v17, 0.0 }
 0x112   : > { %v873_v28 = vpop.f32.mrf.mxu2 }
 0x113   : > { %v1861_v31 = vpack.c.bf16 %v1109_v25, %v1108_v24  ;;  %v874_v32 = vadd.f32 %v2487_v61, %v873_v28  ;;  %v1042_v33 = vpop.f32.mrf.mxu3  ;;  %v1788_v24 = vld [vmem:[%s2402_s19 + $0xf4] sm:$0xf0]  ;;  %v1680_v25 = vld [vmem:[%s2402_s19 + $0x1f0] sm:$0xf]  ;;  %v1554_v28 = vld [vmem:[%s2402_s19 + $0xf8] sm:$0xf0] }
 0x114   : > { %v796_v35 = vpop.f32.mrf.mxu0 }
 0x115   : > { %2001 = vst [vmem:[%s2502_s27 + $0x20] sm:$0xff] %v1861_v31   ;;  %v1043_v38 = vadd.f32 %v1042_v33, %v874_v32  ;;  %v965_v39 = vpop.f32.mrf.mxu1  ;;  %v797_v43 = vadd.f32 %v2487_v61, %v796_v35  ;;  %v1819_v31 = vld [vmem:[%s2402_s19 + $0x1f4] sm:$0xf]  ;;  %v1682_v32 = vld [vmem:[%s2402_s19 + $0x1f8] sm:$0xf0] }
 0x117   : > { %v1141_v41 = vmax.f32 %v1043_v38, 0.0  ;;  %835 = vmatmul.bf16.gmra.mxu0 %v1537_v29  ;;  %915 = vmatmul.bf16.gmra.mxu2 %v1665_v34  ;;  %v966_v47 = vadd.f32 %v965_v39, %v797_v43  ;;  %v1553_v34 = vor.u32 %v1788_v24, %v1552_v23  ;;  %v1681_v39 = vor.u32 %v1820_v26, %v1680_v25 }
 0x118   : > { %1004 = vmatmul.bf16.gmra.mxu1 %v1541_v36  ;;  %1084 = vmatmul.bf16.gmra.mxu3 %v1669_v37 }
 0x119   : > { %v1941_v42 = vpack.c.bf16 %v1141_v41, %v1140_v40  ;;  %v1110_v58 = vmax.f32 %v966_v47, 0.0  ;;  %v1557_v41 = vor.u32 %v1787_v27, %v1554_v28 }
 0x11a   : > { %v876_v44 = vpop.f32.mrf.mxu2 }
 0x11b   : > { %2017 = vst [vmem:[%s2502_s27 + $0xa0] sm:$0xff] %v1941_v42   ;;  %v1045_v45 = vpop.f32.mrf.mxu3  ;;  %v877_v50 = vadd.f32 %v2487_v61, %v876_v44  ;;  %v1685_v42 = vor.u32 %v1819_v31, %v1682_v32 }
 0x11c   : > { %v798_v46 = vpop.f32.mrf.mxu0 }
 0x11d   : > { %v799_v48 = vadd.f32 %v2487_v61, %v798_v46  ;;  %v967_v49 = vpop.f32.mrf.mxu1  ;;  %v1046_v1 = vadd.f32 %v1045_v45, %v877_v50 }
 0x11f   : > { %v968_v51 = vadd.f32 %v967_v49, %v799_v48  ;;  %v1142_v11 = vmax.f32 %v1046_v1, 0.0 }
 0x121   : > { %v1111_v59 = vmax.f32 %v968_v51, 0.0 }
 0x122   : > { %v878_v63 = vpop.f32.mrf.mxu2 }
 0x123   : > { %v1866_v2 = vpack.c.bf16 %v1111_v59, %v1110_v58  ;;  %v879_v3 = vadd.f32 %v2487_v61, %v878_v63  ;;  %v1047_v4 = vpop.f32.mrf.mxu3 }
 0x124   : > { %v801_v6 = vpop.f32.mrf.mxu0 }
 0x125   : > { %2002 = vst [vmem:[%s2502_s27 + $0x28] sm:$0xff] %v1866_v2   ;;  %v1048_v9 = vadd.f32 %v1047_v4, %v879_v3  ;;  %v970_v10 = vpop.f32.mrf.mxu1  ;;  %v802_v14 = vadd.f32 %v2487_v61, %v801_v6 }
 0x127   : > { %v1143_v12 = vmax.f32 %v1048_v9, 0.0  ;;  %840 = vmatmul.bf16.gmra.mxu0 %v1545_v0  ;;  %920 = vmatmul.bf16.gmra.mxu2 %v1673_v5  ;;  %v971_v18 = vadd.f32 %v970_v10, %v802_v14 }
 0x128   : > { %1009 = vmatmul.bf16.gmra.mxu1 %v1549_v7  ;;  %1089 = vmatmul.bf16.gmra.mxu3 %v1677_v8 }
 0x129   : > { %v1946_v13 = vpack.c.bf16 %v1143_v12, %v1142_v11  ;;  %v1112_v29 = vmax.f32 %v971_v18, 0.0 }
 0x12a   : > { %v881_v15 = vpop.f32.mrf.mxu2 }
 0x12b   : > { %2018 = vst [vmem:[%s2502_s27 + $0xa8] sm:$0xff] %v1946_v13   ;;  %v1050_v16 = vpop.f32.mrf.mxu3  ;;  %v882_v21 = vadd.f32 %v2487_v61, %v881_v15 }
 0x12c   : > { %v803_v17 = vpop.f32.mrf.mxu0 }
 0x12d   : > { %v804_v19 = vadd.f32 %v2487_v61, %v803_v17  ;;  %v972_v20 = vpop.f32.mrf.mxu1  ;;  %v1051_v35 = vadd.f32 %v1050_v16, %v882_v21 }
 0x12f   : > { %v973_v22 = vadd.f32 %v972_v20, %v804_v19  ;;  %v1144_v45 = vmax.f32 %v1051_v35, 0.0 }
 0x131   : > { %v1113_v30 = vmax.f32 %v973_v22, 0.0 }
 0x132   : > { %v883_v33 = vpop.f32.mrf.mxu2 }
 0x133   : > { %v1871_v36 = vpack.c.bf16 %v1113_v30, %v1112_v29  ;;  %v884_v37 = vadd.f32 %v2487_v61, %v883_v33  ;;  %v1052_v38 = vpop.f32.mrf.mxu3 }
 0x134   : > { %v806_v40 = vpop.f32.mrf.mxu0 }
 0x135   : > { %2003 = vst [vmem:[%s2502_s27 + $0x30] sm:$0xff] %v1871_v36   ;;  %v1053_v43 = vadd.f32 %v1052_v38, %v884_v37  ;;  %v975_v44 = vpop.f32.mrf.mxu1  ;;  %v807_v48 = vadd.f32 %v2487_v61, %v806_v40 }
 0x137   : > { %v1145_v46 = vmax.f32 %v1053_v43, 0.0  ;;  %845 = vmatmul.bf16.gmra.mxu0 %v1553_v34  ;;  %925 = vmatmul.bf16.gmra.mxu2 %v1681_v39  ;;  %v976_v52 = vadd.f32 %v975_v44, %v807_v48 }
 0x138   : > { %1014 = vmatmul.bf16.gmra.mxu1 %v1557_v41  ;;  %1094 = vmatmul.bf16.gmra.mxu3 %v1685_v42 }
 0x139   : > { %v1951_v47 = vpack.c.bf16 %v1145_v46, %v1144_v45  ;;  %v1114_v57 = vmax.f32 %v976_v52, 0.0 }
 0x13a   : > { %v886_v49 = vpop.f32.mrf.mxu2 }
 0x13b   : > { %2019 = vst [vmem:[%s2502_s27 + $0xb0] sm:$0xff] %v1951_v47   ;;  %v1055_v50 = vpop.f32.mrf.mxu3  ;;  %v887_v55 = vadd.f32 %v2487_v61, %v886_v49 }
 0x13c   : > { %v808_v51 = vpop.f32.mrf.mxu0 }
 0x13d   : > { %v809_v53 = vadd.f32 %v2487_v61, %v808_v51  ;;  %v977_v54 = vpop.f32.mrf.mxu1  ;;  %v1056_v60 = vadd.f32 %v1055_v50, %v887_v55 }
 0x13f   : > { %v978_v56 = vadd.f32 %v977_v54, %v809_v53  ;;  %v1146_v4 = vmax.f32 %v1056_v60, 0.0 }
 0x141   : > { %v1115_v58 = vmax.f32 %v978_v56, 0.0 }
 0x142   : > { %v888_v59 = vpop.f32.mrf.mxu2 }
 0x143   : > { %v1876_v62 = vpack.c.bf16 %v1115_v58, %v1114_v57  ;;  %v889_v63 = vadd.f32 %v2487_v61, %v888_v59  ;;  %v1057_v0 = vpop.f32.mrf.mxu3 }
 0x144   : > { %v811_v1 = vpop.f32.mrf.mxu0 }
 0x145   : > { %2004 = vst [vmem:[%s2502_s27 + $0x38] sm:$0xff] %v1876_v62   ;;  %v1058_v2 = vadd.f32 %v1057_v0, %v889_v63  ;;  %v980_v3 = vpop.f32.mrf.mxu1  ;;  %v812_v7 = vadd.f32 %v2487_v61, %v811_v1 }
 0x147   : > { %v1147_v5 = vmax.f32 %v1058_v2, 0.0  ;;  %v981_v11 = vadd.f32 %v980_v3, %v812_v7 }
 0x149   : > { %v1956_v6 = vpack.c.bf16 %v1147_v5, %v1146_v4  ;;  %v1116_v16 = vmax.f32 %v981_v11, 0.0 }
 0x14a   : > { %v891_v8 = vpop.f32.mrf.mxu2 }
 0x14b   : > { %2020 = vst [vmem:[%s2502_s27 + $0xb8] sm:$0xff] %v1956_v6   ;;  %v1060_v9 = vpop.f32.mrf.mxu3  ;;  %v892_v14 = vadd.f32 %v2487_v61, %v891_v8 }
 0x14c   : > { %v813_v10 = vpop.f32.mrf.mxu0 }
 0x14d   : > { %v814_v12 = vadd.f32 %v2487_v61, %v813_v10  ;;  %v982_v13 = vpop.f32.mrf.mxu1  ;;  %v1061_v19 = vadd.f32 %v1060_v9, %v892_v14 }
 0x14f   : > { %v983_v15 = vadd.f32 %v982_v13, %v814_v12  ;;  %v1148_v26 = vmax.f32 %v1061_v19, 0.0 }
 0x151   : > { %v1117_v17 = vmax.f32 %v983_v15, 0.0 }
 0x152   : > { %v893_v18 = vpop.f32.mrf.mxu2 }
 0x153   : > { %v1881_v20 = vpack.c.bf16 %v1117_v17, %v1116_v16  ;;  %v894_v21 = vadd.f32 %v2487_v61, %v893_v18  ;;  %v1062_v22 = vpop.f32.mrf.mxu3 }
 0x154   : > { %v816_v23 = vpop.f32.mrf.mxu0 }
 0x155   : > { %2005 = vst [vmem:[%s2502_s27 + $0x40] sm:$0xff] %v1881_v20   ;;  %v1063_v24 = vadd.f32 %v1062_v22, %v894_v21  ;;  %v985_v25 = vpop.f32.mrf.mxu1  ;;  %v817_v29 = vadd.f32 %v2487_v61, %v816_v23 }
 0x157   : > { %v1149_v27 = vmax.f32 %v1063_v24, 0.0  ;;  %v986_v33 = vadd.f32 %v985_v25, %v817_v29 }
 0x159   : > { %v1961_v28 = vpack.c.bf16 %v1149_v27, %v1148_v26  ;;  %v1118_v38 = vmax.f32 %v986_v33, 0.0 }
 0x15a   : > { %v896_v30 = vpop.f32.mrf.mxu2 }
 0x15b   : > { %2021 = vst [vmem:[%s2502_s27 + $0xc0] sm:$0xff] %v1961_v28   ;;  %v1065_v31 = vpop.f32.mrf.mxu3  ;;  %v897_v36 = vadd.f32 %v2487_v61, %v896_v30 }
 0x15c   : > { %v818_v32 = vpop.f32.mrf.mxu0 }
 0x15d   : > { %v819_v34 = vadd.f32 %v2487_v61, %v818_v32  ;;  %v987_v35 = vpop.f32.mrf.mxu1  ;;  %v1066_v41 = vadd.f32 %v1065_v31, %v897_v36 }
 0x15f   : > { %v988_v37 = vadd.f32 %v987_v35, %v819_v34  ;;  %v1150_v48 = vmax.f32 %v1066_v41, 0.0 }
 0x161   : > { %v1119_v39 = vmax.f32 %v988_v37, 0.0 }
 0x162   : > { %v898_v40 = vpop.f32.mrf.mxu2 }
 0x163   : > { %v1886_v42 = vpack.c.bf16 %v1119_v39, %v1118_v38  ;;  %v899_v43 = vadd.f32 %v2487_v61, %v898_v40  ;;  %v1067_v44 = vpop.f32.mrf.mxu3 }
 0x164   : > { %v821_v45 = vpop.f32.mrf.mxu0 }
 0x165   : > { %2006 = vst [vmem:[%s2502_s27 + $0x48] sm:$0xff] %v1886_v42   ;;  %v1068_v46 = vadd.f32 %v1067_v44, %v899_v43  ;;  %v990_v47 = vpop.f32.mrf.mxu1  ;;  %v822_v51 = vadd.f32 %v2487_v61, %v821_v45 }
 0x167   : > { %v1151_v49 = vmax.f32 %v1068_v46, 0.0  ;;  %v991_v55 = vadd.f32 %v990_v47, %v822_v51 }
 0x169   : > { %v1966_v50 = vpack.c.bf16 %v1151_v49, %v1150_v48  ;;  %v1120_v60 = vmax.f32 %v991_v55, 0.0 }
 0x16a   : > { %v901_v52 = vpop.f32.mrf.mxu2 }
 0x16b   : > { %2022 = vst [vmem:[%s2502_s27 + $0xc8] sm:$0xff] %v1966_v50   ;;  %v1070_v53 = vpop.f32.mrf.mxu3  ;;  %v902_v58 = vadd.f32 %v2487_v61, %v901_v52 }
 0x16c   : > { %v823_v54 = vpop.f32.mrf.mxu0 }
 0x16d   : > { %v824_v56 = vadd.f32 %v2487_v61, %v823_v54  ;;  %v992_v57 = vpop.f32.mrf.mxu1  ;;  %v1071_v0 = vadd.f32 %v1070_v53, %v902_v58 }
 0x16f   : > { %v993_v59 = vadd.f32 %v992_v57, %v824_v56  ;;  %v1152_v7 = vmax.f32 %v1071_v0, 0.0 }
 0x171   : > { %v1121_v62 = vmax.f32 %v993_v59, 0.0 }
 0x172   : > { %v903_v63 = vpop.f32.mrf.mxu2 }
 0x173   : > { %v1891_v1 = vpack.c.bf16 %v1121_v62, %v1120_v60  ;;  %v904_v2 = vadd.f32 %v2487_v61, %v903_v63  ;;  %v1072_v3 = vpop.f32.mrf.mxu3 }
 0x174   : > { %v826_v4 = vpop.f32.mrf.mxu0 }
 0x175   : > { %2007 = vst [vmem:[%s2502_s27 + $0x50] sm:$0xff] %v1891_v1   ;;  %v1073_v5 = vadd.f32 %v1072_v3, %v904_v2  ;;  %v995_v6 = vpop.f32.mrf.mxu1  ;;  %v827_v10 = vadd.f32 %v2487_v61, %v826_v4 }
 0x177   : > { %v1153_v8 = vmax.f32 %v1073_v5, 0.0  ;;  %v996_v14 = vadd.f32 %v995_v6, %v827_v10 }
 0x179   : > { %v1971_v9 = vpack.c.bf16 %v1153_v8, %v1152_v7  ;;  %v1122_v19 = vmax.f32 %v996_v14, 0.0 }
 0x17a   : > { %v906_v11 = vpop.f32.mrf.mxu2 }
 0x17b   : > { %2023 = vst [vmem:[%s2502_s27 + $0xd0] sm:$0xff] %v1971_v9   ;;  %v1075_v12 = vpop.f32.mrf.mxu3  ;;  %v907_v17 = vadd.f32 %v2487_v61, %v906_v11 }
 0x17c   : > { %v828_v13 = vpop.f32.mrf.mxu0 }
 0x17d   : > { %v829_v15 = vadd.f32 %v2487_v61, %v828_v13  ;;  %v997_v16 = vpop.f32.mrf.mxu1  ;;  %v1076_v22 = vadd.f32 %v1075_v12, %v907_v17 }
 0x17f   : > { %v998_v18 = vadd.f32 %v997_v16, %v829_v15  ;;  %v1154_v29 = vmax.f32 %v1076_v22, 0.0 }
 0x181   : > { %v1123_v20 = vmax.f32 %v998_v18, 0.0 }
 0x182   : > { %v908_v21 = vpop.f32.mrf.mxu2 }
 0x183   : > { %v1896_v23 = vpack.c.bf16 %v1123_v20, %v1122_v19  ;;  %v909_v24 = vadd.f32 %v2487_v61, %v908_v21  ;;  %v1077_v25 = vpop.f32.mrf.mxu3 }
 0x184   : > { %v831_v26 = vpop.f32.mrf.mxu0 }
 0x185   : > { %2008 = vst [vmem:[%s2502_s27 + $0x58] sm:$0xff] %v1896_v23   ;;  %v1078_v27 = vadd.f32 %v1077_v25, %v909_v24  ;;  %v1000_v28 = vpop.f32.mrf.mxu1  ;;  %v832_v32 = vadd.f32 %v2487_v61, %v831_v26 }
 0x187   : > { %v1155_v30 = vmax.f32 %v1078_v27, 0.0  ;;  %v1001_v36 = vadd.f32 %v1000_v28, %v832_v32 }
 0x189   : > { %v1976_v31 = vpack.c.bf16 %v1155_v30, %v1154_v29  ;;  %v1124_v41 = vmax.f32 %v1001_v36, 0.0 }
 0x18a   : > { %v911_v33 = vpop.f32.mrf.mxu2 }
 0x18b   : > { %2024 = vst [vmem:[%s2502_s27 + $0xd8] sm:$0xff] %v1976_v31   ;;  %v1080_v34 = vpop.f32.mrf.mxu3  ;;  %v912_v39 = vadd.f32 %v2487_v61, %v911_v33 }
 0x18c   : > { %v833_v35 = vpop.f32.mrf.mxu0 }
 0x18d   : > { %v834_v37 = vadd.f32 %v2487_v61, %v833_v35  ;;  %v1002_v38 = vpop.f32.mrf.mxu1  ;;  %v1081_v44 = vadd.f32 %v1080_v34, %v912_v39 }
 0x18f   : > { %v1003_v40 = vadd.f32 %v1002_v38, %v834_v37  ;;  %v1156_v51 = vmax.f32 %v1081_v44, 0.0 }
 0x191   : > { %v1125_v42 = vmax.f32 %v1003_v40, 0.0 }
 0x192   : > { %v913_v43 = vpop.f32.mrf.mxu2 }
 0x193   : > { %v1901_v45 = vpack.c.bf16 %v1125_v42, %v1124_v41  ;;  %v914_v46 = vadd.f32 %v2487_v61, %v913_v43  ;;  %v1082_v47 = vpop.f32.mrf.mxu3 }
 0x194   : > { %v836_v48 = vpop.f32.mrf.mxu0 }
 0x195   : > { %2009 = vst [vmem:[%s2502_s27 + $0x60] sm:$0xff] %v1901_v45   ;;  %v1083_v49 = vadd.f32 %v1082_v47, %v914_v46  ;;  %v1005_v50 = vpop.f32.mrf.mxu1  ;;  %v837_v54 = vadd.f32 %v2487_v61, %v836_v48 }
 0x197   : > { %v1157_v52 = vmax.f32 %v1083_v49, 0.0  ;;  %v1006_v58 = vadd.f32 %v1005_v50, %v837_v54 }
 0x199   : > { %v1981_v53 = vpack.c.bf16 %v1157_v52, %v1156_v51  ;;  %v1126_v0 = vmax.f32 %v1006_v58, 0.0 }
 0x19a   : > { %v916_v55 = vpop.f32.mrf.mxu2 }
 0x19b   : > { %2025 = vst [vmem:[%s2502_s27 + $0xe0] sm:$0xff] %v1981_v53   ;;  %v1085_v56 = vpop.f32.mrf.mxu3  ;;  %v917_v62 = vadd.f32 %v2487_v61, %v916_v55 }
 0x19c   : > { %v838_v57 = vpop.f32.mrf.mxu0 }
 0x19d   : > { %v839_v59 = vadd.f32 %v2487_v61, %v838_v57  ;;  %v1007_v60 = vpop.f32.mrf.mxu1  ;;  %v1086_v3 = vadd.f32 %v1085_v56, %v917_v62 }
 0x19f   : > { %v1008_v63 = vadd.f32 %v1007_v60, %v839_v59  ;;  %v1158_v10 = vmax.f32 %v1086_v3, 0.0 }
 0x1a1   : > { %v1127_v1 = vmax.f32 %v1008_v63, 0.0 }
 0x1a2   : > { %v918_v2 = vpop.f32.mrf.mxu2 }
 0x1a3   : > { %v1906_v4 = vpack.c.bf16 %v1127_v1, %v1126_v0  ;;  %v919_v5 = vadd.f32 %v2487_v61, %v918_v2  ;;  %v1087_v6 = vpop.f32.mrf.mxu3 }
 0x1a4   : > { %v841_v7 = vpop.f32.mrf.mxu0 }
 0x1a5   : > { %2010 = vst [vmem:[%s2502_s27 + $0x68] sm:$0xff] %v1906_v4   ;;  %v1088_v8 = vadd.f32 %v1087_v6, %v919_v5  ;;  %v1010_v9 = vpop.f32.mrf.mxu1  ;;  %v842_v13 = vadd.f32 %v2487_v61, %v841_v7 }
 0x1a7   : > { %v1159_v11 = vmax.f32 %v1088_v8, 0.0  ;;  %v1011_v17 = vadd.f32 %v1010_v9, %v842_v13 }
 0x1a9   : > { %v1986_v12 = vpack.c.bf16 %v1159_v11, %v1158_v10  ;;  %v1128_v22 = vmax.f32 %v1011_v17, 0.0 }
 0x1aa   : > { %v921_v14 = vpop.f32.mrf.mxu2 }
 0x1ab   : > { %2026 = vst [vmem:[%s2502_s27 + $0xe8] sm:$0xff] %v1986_v12   ;;  %v1090_v15 = vpop.f32.mrf.mxu3  ;;  %v922_v20 = vadd.f32 %v2487_v61, %v921_v14 }
 0x1ac   : > { %v843_v16 = vpop.f32.mrf.mxu0 }
 0x1ad   : > { %v844_v18 = vadd.f32 %v2487_v61, %v843_v16  ;;  %v1012_v19 = vpop.f32.mrf.mxu1  ;;  %v1091_v25 = vadd.f32 %v1090_v15, %v922_v20 }
 0x1af   : > { %v1013_v21 = vadd.f32 %v1012_v19, %v844_v18  ;;  %v1160_v32 = vmax.f32 %v1091_v25, 0.0 }
 0x1b1   : > { %v1129_v23 = vmax.f32 %v1013_v21, 0.0 }
 0x1b2   : > { %v923_v24 = vpop.f32.mrf.mxu2 }
 0x1b3   : > { %v1911_v26 = vpack.c.bf16 %v1129_v23, %v1128_v22  ;;  %v924_v27 = vadd.f32 %v2487_v61, %v923_v24  ;;  %v1092_v28 = vpop.f32.mrf.mxu3 }
 0x1b4   : > { %v846_v29 = vpop.f32.mrf.mxu0 }
 0x1b5   : > { %2011 = vst [vmem:[%s2502_s27 + $0x70] sm:$0xff] %v1911_v26   ;;  %v1093_v30 = vadd.f32 %v1092_v28, %v924_v27  ;;  %v1015_v31 = vpop.f32.mrf.mxu1  ;;  %v847_v35 = vadd.f32 %v2487_v61, %v846_v29 }
 0x1b7   : > { %v1161_v33 = vmax.f32 %v1093_v30, 0.0  ;;  %v1016_v39 = vadd.f32 %v1015_v31, %v847_v35 }
 0x1b9   : > { %v1991_v34 = vpack.c.bf16 %v1161_v33, %v1160_v32  ;;  %v1130_v44 = vmax.f32 %v1016_v39, 0.0 }
 0x1ba   : > { %v926_v36 = vpop.f32.mrf.mxu2 }
 0x1bb   : > { %2027 = vst [vmem:[%s2502_s27 + $0xf0] sm:$0xff] %v1991_v34   ;;  %v1095_v37 = vpop.f32.mrf.mxu3  ;;  %v927_v42 = vadd.f32 %v2487_v61, %v926_v36 }
 0x1bc   : > { %v848_v38 = vpop.f32.mrf.mxu0 }
 0x1bd   : > { %v849_v40 = vadd.f32 %v2487_v61, %v848_v38  ;;  %v1017_v41 = vpop.f32.mrf.mxu1  ;;  %v1096_v47 = vadd.f32 %v1095_v37, %v927_v42 }
 0x1bf   : > { %v1018_v43 = vadd.f32 %v1017_v41, %v849_v40  ;;  %v1162_v52 = vmax.f32 %v1096_v47, 0.0 }
 0x1c1   : > { %v1131_v45 = vmax.f32 %v1018_v43, 0.0 }
 0x1c2   : > { %v928_v46 = vpop.f32.mrf.mxu2 }
 0x1c3   : > { %v1916_v48 = vpack.c.bf16 %v1131_v45, %v1130_v44  ;;  %v929_v49 = vadd.f32 %v2487_v61, %v928_v46  ;;  %v1097_v50 = vpop.f32.mrf.mxu3 }
 0x1c5   : > { %2012 = vst [vmem:[%s2502_s27 + $0x78] sm:$0xff] %v1916_v48   ;;  %v1098_v51 = vadd.f32 %v1097_v50, %v929_v49 }
 0x1c7   : > { %v1163_v53 = vmax.f32 %v1098_v51, 0.0 }
 0x1c9   : > { %v1996_v54 = vpack.c.bf16 %v1163_v53, %v1162_v52 }
 0x1cb   : > { %2028 = vst [vmem:[%s2502_s27 + $0xf8] sm:$0xff] %v1996_v54  }
 0x1cc   : > { %2212 = shalt.err (!%p2209_p12)
}
 0x1cd   : > { %s2278_s6 = smov 64   ;;  %s2279_s1 = smov 4  }
 0x1ce   : > { %2051 = dma.vmem_to_hbm [thread:$0]  (%p2378_p3), %s1307_s26, 4096, %s1309_s28, %s1293_s15, %s2278_s6, %s2278_s6, %s2279_s1  }
 0x1cf PF: > { %p2068_p13 = scmp.ge.s32.totalorder %s2271_s17, 2  ;;  %s1323_s20 = sand.u32 1, %s2251_s12  }
 0x1d0   : > { %s1324_s22 = scalar_lea.sflag [#allocation4], %s1323_s20 }
 0x1d1   : > { %p2062_p0 = pnand %p2068_p13, %p2349_p6 }
 0x1d3   : > { %p2063_p5 = pneg %p2062_p0 }
 0x1d5   : > { %2246 = dma.done.wait (%p2063_p5), %s1324_s22, 4096  }
 0x1d6   : > { %2248 = vsyncadd (%p2063_p5), %s1324_s22, 4294963200  ;;  %s20_s17 = sadd.s32 1, %s2271_s17   ;;  %s2695_s12 = smov %s2255_s13 }
 0x1d7   : > { %p17_p7 = scmp.ge.s32.totalorder %s20_s17, 6   ;;  %s2696_s13 = smov %s2259_s14 }
 0x1d8   : > { %s2697_s14 = smov %s2387_s18  ;;  %s2698_s15 = smov %s2267_s16 }
 0x1d9   : > { %s2699_s16 = smov %s2701_s5  ;;  %19 = sbr.rel (!%p17_p7) target bundleno = 9 (0x9), region = 85 }
 0x1de   :  { %1330 = vsyncpa [#allocation3], 1 }
 0x1df   :  { %1332 = vsyncpa [#allocation3 + $0x1], 1 }
 0x1e0   :  { %1333 = vsyncpa [#allocation6], 1 }
 0x1e1   :  { %1334 = vsyncpa [#allocation4], 1 }
 0x1e2   :  { %1336 = vsyncpa [#allocation4 + $0x1], 1 }

</bundles_post_ra>
